<compile_context>
chip_gen: v7x
topology: tpu7x:2x2x1
jax: 0.10.0
libtpu: 0.0.40
codegen_flags: <defaults>
</compile_context>

<pallas_src>
import jax
import jax.numpy as jnp
from jax import lax
from jax.experimental import pallas as pl
from jax.experimental.pallas import tpu as pltpu

HIDDEN = 64
TILE_B = 512              # mem-bound sweet spot (>=85% HBM roofline at 512)
SMALL_BATCH_CUTOFF = 256  # below this, the no-grid fused path wins


def _round_up(x, m):
    return ((x + m - 1) // m) * m


def _critic_small_kernel(x_ref, w1_ref, b1_ref, w2_ref, b2_ref, w3_ref, b3_ref,
                         o_ref):
    x = x_ref[...]
    h1 = jnp.tanh(jnp.dot(x, w1_ref[...], preferred_element_type=jnp.float32)
                  + b1_ref[...])
    h2 = jnp.tanh(jnp.dot(h1, w2_ref[...], preferred_element_type=jnp.float32)
                  + b2_ref[...])
    o_ref[...] = (jnp.dot(h2, w3_ref[...], preferred_element_type=jnp.float32)
                  + b3_ref[...]).astype(o_ref.dtype)


def _critic_tiled_kernel(x_ref, w1_ref, b1_ref, w2_ref, b2_ref, w3r_ref, b3_ref,
                         o_ref):
    # x_ref: (tile_b, state_dim); w3r_ref: (1, HIDDEN); o_ref: (1, tile_b).
    x = x_ref[...]
    h1 = jnp.tanh(jnp.dot(x, w1_ref[...], preferred_element_type=jnp.float32)
                  + b1_ref[...])
    h2 = jnp.tanh(jnp.dot(h1, w2_ref[...], preferred_element_type=jnp.float32)
                  + b2_ref[...])
    # Last layer as (1, 64) contracted against h2's feature dim -> (1, tile_b):
    # lane-dense output row instead of masked (tile_b, 1) partial stores.
    y = lax.dot_general(w3r_ref[...], h2,
                        dimension_numbers=(((1,), (1,)), ((), ())),
                        preferred_element_type=jnp.float32)
    o_ref[...] = (y + b3_ref[...]).astype(o_ref.dtype)


def _cost_estimate(batch, state_dim, in_bytes_per_elt):
    flops = 2 * batch * (state_dim * HIDDEN + HIDDEN * HIDDEN + HIDDEN)
    transcendentals = 2 * HIDDEN * batch  # two tanh layers of width 64
    weight_bytes = 4 * (state_dim * HIDDEN + HIDDEN + HIDDEN * HIDDEN + HIDDEN
                        + HIDDEN + 1)
    bytes_accessed = (batch * state_dim * in_bytes_per_elt  # x stream
                      + batch * 4                           # output
                      + weight_bytes)
    return pl.CostEstimate(flops=flops, transcendentals=transcendentals,
                           bytes_accessed=bytes_accessed)


def critic_forward(state, params, *, use_bf16=False):
    """state: (B, state_dim) float32 -> value: (B, 1) float32."""
    w1, b1, w2, b2, w3, b3 = params
    B, state_dim = state.shape

    if use_bf16:
        # Only the HBM-bound stream (x) and its matmul partner w1 go bf16;
        # everything downstream stays f32 (f32 accumulate, tanh, bias adds).
        x = state.astype(jnp.bfloat16)
        w1c = w1.astype(jnp.bfloat16)
        in_bytes = 2
    else:
        x = state
        w1c = w1
        in_bytes = 4

    if B < SMALL_BATCH_CUTOFF:
        # No-grid fast path: single fused invocation, everything in VMEM.
        full = lambda shape: pl.BlockSpec(shape, lambda: tuple(0 for _ in shape))
        return pl.pallas_call(
            _critic_small_kernel,
            out_shape=jax.ShapeDtypeStruct((B, 1), jnp.float32),
            in_specs=[full(x.shape), full(w1c.shape), full(b1.shape),
                      full(w2.shape), full(b2.shape), full(w3.shape),
                      full(b3.shape)],
            out_specs=full((B, 1)),
            cost_estimate=_cost_estimate(B, state_dim, in_bytes),
        )(x, w1c, b1, w2, b2, w3, b3)

    # Gridded path: tile the batch, keep weights resident, lane-dense output.
    # Adaptive tile: don't pad a mid-size batch all the way to TILE_B.
    tile_b = min(TILE_B, _round_up(B, 128))
    num_tiles = pl.cdiv(B, tile_b)
    B_pad = num_tiles * tile_b
    if B_pad != B:
        x = jnp.pad(x, ((0, B_pad - B), (0, 0)))
    w3r = w3.reshape(1, HIDDEN)  # (64, 1) -> (1, 64), tiny f32 weight

    const = lambda shape: pl.BlockSpec(shape, lambda i: (0, 0))
    out_row = pl.pallas_call(
        _critic_tiled_kernel,
        out_shape=jax.ShapeDtypeStruct((1, B_pad), jnp.float32),
        grid=(num_tiles,),
        in_specs=[
            pl.BlockSpec((tile_b, state_dim), lambda i: (i, 0)),  # x batch tile
            const(w1c.shape), const(b1.shape),
            const(w2.shape), const(b2.shape),
            const(w3r.shape), const(b3.shape),
        ],
        out_specs=pl.BlockSpec((1, tile_b), lambda i: (0, i)),
        compiler_params=pltpu.CompilerParams(
            dimension_semantics=("parallel",),      # megacore sharding on v7x
            vmem_limit_bytes=32 * 1024 * 1024,
        ),
        cost_estimate=_cost_estimate(B, state_dim, in_bytes),
    )(x, w1c, b1, w2, b2, w3r, b3)

    return out_row[0, :B].reshape(B, 1)


def init_critic_params(key, state_dim, hidden=HIDDEN):
    """Deterministic init mimicking PyTorch nn.Linear default:
    U(-1/sqrt(fan_in), 1/sqrt(fan_in)) for weights and biases."""
    def linear(k, fan_in, fan_out):
        kw, kb = jax.random.split(k)
        bound = 1.0 / jnp.sqrt(fan_in)
        w = jax.random.uniform(kw, (fan_in, fan_out), jnp.float32, -bound, bound)
        b = jax.random.uniform(kb, (1, fan_out), jnp.float32, -bound, bound)
        return w, b

    k1, k2, k3 = jax.random.split(key, 3)
    w1, b1 = linear(k1, state_dim, hidden)
    w2, b2 = linear(k2, hidden, hidden)
    w3, b3 = linear(k3, hidden, 1)
    return (w1, b1, w2, b2, w3, b3)


def critic_reference(state, params):
    """Pure-JAX reference of the same forward pass (for validation)."""
    w1, b1, w2, b2, w3, b3 = params
    h1 = jnp.tanh(state @ w1 + b1)
    h2 = jnp.tanh(h1 @ w2 + b2)
    return h2 @ w3 + b3


if __name__ == "__main__":
    key = jax.random.PRNGKey(0)
    k_params, k_small, k_big = jax.random.split(key, 3)

    state_dim = 16
    params = init_critic_params(k_params, state_dim)

    # 1) Small-batch no-grid path (the typical RL rollout use case).
    batch = 8
    state = jax.random.normal(k_small, (batch, state_dim), dtype=jnp.float32)
    value = jax.block_until_ready(critic_forward(state, params))
    ref = critic_reference(state, params)
    assert value.shape == (batch, 1)
    assert jnp.allclose(value, ref, atol=1e-5, rtol=1e-5)

    # 2) Tiled/gridded path: multiple tiles + non-multiple-of-tile batch to
    #    exercise the padding / adaptive-tile logic and lane-dense output.
    big_batch = 700
    big_state = jax.random.normal(k_big, (big_batch, state_dim), dtype=jnp.float32)
    big_value = jax.block_until_ready(critic_forward(big_state, params))
    big_ref = critic_reference(big_state, params)
    assert big_value.shape == (big_batch, 1)
    assert jnp.allclose(big_value, big_ref, atol=1e-5, rtol=1e-5)

    # 3) bf16 input-stream variant (halves HBM bytes on the x stream).
    bf16_value = jax.block_until_ready(
        critic_forward(big_state, params, use_bf16=True))
    assert bf16_value.shape == (big_batch, 1)
    assert float(jnp.max(jnp.abs(bf16_value - big_ref))) < 1e-1

    print("KERNEL_OK")
</pallas_src>

<mosaic_0001>
module attributes {stable_mosaic.version = 11 : i64} {
  func.func @_critic_small_kernel(%arg0: memref<8x16xf32, #tpu.memory_space<vmem>>, %arg1: memref<16x64xf32, #tpu.memory_space<vmem>>, %arg2: memref<1x64xf32, #tpu.memory_space<vmem>>, %arg3: memref<64x64xf32, #tpu.memory_space<vmem>>, %arg4: memref<1x64xf32, #tpu.memory_space<vmem>>, %arg5: memref<64x1xf32, #tpu.memory_space<vmem>>, %arg6: memref<1x1xf32, #tpu.memory_space<vmem>>, %arg7: memref<8x1xf32, #tpu.memory_space<vmem>>) attributes {dimension_semantics = [], scalar_prefetch = 0 : i64, scratch_operands = 0 : i64, tpu.core_type = #tpu.core_type<tc>} {
    %c0 = arith.constant 0 : index
    %c0_0 = arith.constant 0 : index
    %0 = vector.load %arg0[%c0, %c0_0] : memref<8x16xf32, #tpu.memory_space<vmem>>, vector<8x16xf32>
    %c0_1 = arith.constant 0 : index
    %c0_2 = arith.constant 0 : index
    %1 = vector.load %arg1[%c0_1, %c0_2] : memref<16x64xf32, #tpu.memory_space<vmem>>, vector<16x64xf32>
    %cst = arith.constant dense<0.000000e+00> : vector<8x64xf32>
    %2 = tpu.matmul %0, %1, %cst {dimension_numbers = #tpu.dot_dimension_numbers<[1], [0], [0], [1], [0, 0, 1, 1], [], []>} : vector<8x16xf32>, vector<16x64xf32>, vector<8x64xf32> -> vector<8x64xf32>
    %c0_3 = arith.constant 0 : index
    %c0_4 = arith.constant 0 : index
    %3 = vector.load %arg2[%c0_3, %c0_4] : memref<1x64xf32, #tpu.memory_space<vmem>>, vector<1x64xf32>
    %4 = vector.broadcast %3 : vector<1x64xf32> to vector<8x64xf32>
    %5 = arith.addf %2, %4 : vector<8x64xf32>
    %6 = math.tanh %5 : vector<8x64xf32>
    %c0_5 = arith.constant 0 : index
    %c0_6 = arith.constant 0 : index
    %7 = vector.load %arg3[%c0_5, %c0_6] : memref<64x64xf32, #tpu.memory_space<vmem>>, vector<64x64xf32>
    %cst_7 = arith.constant dense<0.000000e+00> : vector<8x64xf32>
    %8 = tpu.matmul %6, %7, %cst_7 {dimension_numbers = #tpu.dot_dimension_numbers<[1], [0], [0], [1], [0, 0, 1, 1], [], []>} : vector<8x64xf32>, vector<64x64xf32>, vector<8x64xf32> -> vector<8x64xf32>
    %c0_8 = arith.constant 0 : index
    %c0_9 = arith.constant 0 : index
    %9 = vector.load %arg4[%c0_8, %c0_9] : memref<1x64xf32, #tpu.memory_space<vmem>>, vector<1x64xf32>
    %10 = vector.broadcast %9 : vector<1x64xf32> to vector<8x64xf32>
    %11 = arith.addf %8, %10 : vector<8x64xf32>
    %12 = math.tanh %11 : vector<8x64xf32>
    %c0_10 = arith.constant 0 : index
    %c0_11 = arith.constant 0 : index
    %13 = vector.load %arg5[%c0_10, %c0_11] : memref<64x1xf32, #tpu.memory_space<vmem>>, vector<64x1xf32>
    %cst_12 = arith.constant dense<0.000000e+00> : vector<8x1xf32>
    %14 = tpu.matmul %12, %13, %cst_12 {dimension_numbers = #tpu.dot_dimension_numbers<[1], [0], [0], [1], [0, 0, 1, 1], [], []>} : vector<8x64xf32>, vector<64x1xf32>, vector<8x1xf32> -> vector<8x1xf32>
    %c0_13 = arith.constant 0 : index
    %c0_14 = arith.constant 0 : index
    %15 = vector.load %arg6[%c0_13, %c0_14] : memref<1x1xf32, #tpu.memory_space<vmem>>, vector<1x1xf32>
    %16 = vector.broadcast %15 : vector<1x1xf32> to vector<8x1xf32>
    %17 = arith.addf %14, %16 : vector<8x1xf32>
    %c0_15 = arith.constant 0 : index
    %c0_16 = arith.constant 0 : index
    %18 = vector.load %arg7[%c0_15, %c0_16] : memref<8x1xf32, #tpu.memory_space<vmem>>, vector<8x1xf32>
    tpu.vector_store %arg7[%c0_15, %c0_16], %17 {strides = array<i32>} : memref<8x1xf32, #tpu.memory_space<vmem>>, vector<8x1xf32>,
    return
  }
}

</mosaic_0001>

<bundles_post_ra>
// kernel: tpu_custom_call.1
= control target key start
LH: loop header
LB: loop body
LE: loop exit
PB: predicated region body
PF: predicated region fallthrough
CT: control target
= control target key end

     0   :  { %s616_s0 = inlined_call_operand.hbm [shape: f32[8,16], index: 0, kind: input, shape index: {}]   ;;  %s617_s1 = inlined_call_operand.vmem [shape: f32[16,64], index: 1, kind: input, shape index: {}]   ;;  %s618_s2 = inlined_call_operand.hbm [shape: f32[1,64], index: 2, kind: input, shape index: {}]   ;;  %s619_s3 = inlined_call_operand.vmem [shape: f32[64,64], index: 3, kind: input, shape index: {}]   ;;  %s620_s4 = inlined_call_operand.vmem [shape: f32[1,64], index: 4, kind: input, shape index: {}]   ;;  %s621_s5 = inlined_call_operand.vmem [shape: f32[64,1], index: 5, kind: input, shape index: {}]   ;;  %s622_s6 = inlined_call_operand.<no memory space> [shape: f32[1,1], index: 6, kind: input, shape index: {}]   ;;  %s623_s7 = inlined_call_operand.vmem [shape: f32[8,1], index: 7, kind: output, shape index: {}]  }
   0x1   :  { %v12_v0 = vstv %s622_s6 }
   0x2   :  { %13 = vst [vmem:[#allocation2] sm:$0x1] %v12_v0 }
   0x3   :  { %14 = vsyncpa [#allocation4], 0 }
   0x4   :  { %15 = vsyncpa [#allocation6], 0  ;;  %s479_s26 = smov [#allocation3]   ;;  %s480_s28 = smov [#allocation5]  }
   0x5   :  { %s22_s27 = sshll.u32 %s479_s26, 4  ;;  %s34_s29 = sshll.u32 %s480_s28, 4  ;;  %s23_s27 = int_to_ptr.vmem [resolvable:$true] %s22_s27  ;;  %s35_s29 = int_to_ptr.vmem [resolvable:$true] %s34_s29 }
   0x6   :  { %s431_s9 = scalar_lea.hbm %s616_s0, 128 }
   0x7   :  { %p432_p0 = scmp.ne.s32.totalorder %s616_s0, %s431_s9  ;;  %p435_p1 = scmp.lt.u32.totalorder %s431_s9, %s616_s0 }
   0x9   :  { %p437_p2 = pnand %p435_p1, %p432_p0 }
   0xb   :  { %440 = shalt.err (!%p437_p2)
}
   0xc   :  { %s441_s6 = scalar_lea.vmem %s23_s27, 128  ;;  %p446_p4 = scmp.lt.s32.totalorder %s23_s27, %s23_s27 }
   0xd   :  { %p442_p3 = scmp.ne.s32.totalorder %s23_s27, %s441_s6  ;;  %p447_p5 = scmp.lt.s32.totalorder %s441_s6, %s441_s6 }
   0xf   :  { %p448_p6 = por %p447_p5, %p446_p4 }
  0x11   :  { %p449_p7 = pnand %p448_p6, %p442_p3 }
  0x13   :  { %452 = shalt.err (!%p449_p7)
}
  0x14   :  { %25 = dma.hbm_to_vmem [thread:$0]  %s616_s0, 128, %s23_s27, [#allocation4]  }
  0x15   :  { %s453_s18 = scalar_lea.hbm %s618_s2, 16 }
  0x16   :  { %p454_p8 = scmp.ne.s32.totalorder %s618_s2, %s453_s18  ;;  %p457_p9 = scmp.lt.u32.totalorder %s453_s18, %s618_s2 }
  0x18   :  { %p459_p10 = pnand %p457_p9, %p454_p8 }
  0x1a   :  { %462 = shalt.err (!%p459_p10)
}
  0x1b   :  { %s463_s23 = scalar_lea.vmem %s35_s29, 16  ;;  %s467_s24 = scalar_lea.vmem %s35_s29, 32 }
  0x1c   :  { %p464_p11 = scmp.ne.s32.totalorder %s35_s29, %s463_s23  ;;  %p468_p12 = scmp.lt.s32.totalorder %s35_s29, %s35_s29 }
  0x1d   :  { %p469_p13 = scmp.lt.s32.totalorder %s467_s24, %s463_s23 }
  0x1f   :  { %p470_p0 = por %p469_p13, %p468_p12 }
  0x21   :  { %p471_p1 = pnand %p470_p0, %p464_p11 }
  0x23   :  { %474 = shalt.err (!%p471_p1)
}
  0x24   :  { %37 = dma.hbm_to_vmem [thread:$0]  %s618_s2, 16, %s35_s29, [#allocation6]  }
  0x25   :  { %475 = dma.done.wait [#allocation4], 128  }
  0x26   :  { %476 = vsyncadd [#allocation4], 4294967168 }
  0x27   :  { %477 = dma.done.wait [#allocation6], 16  }
  0x28   :  { %478 = vsyncadd [#allocation6], 4294967280  ;;  %v481_v1 = vmov 0.0|0.0   ;;  %vm482_vm0 = vmmov 0   ;;  %v483_v2 = vmov 0.0   ;;  %v53_v3 = vld [vmem:[%s617_s1] sm:$0xff] }
  0x29   :  { %395 = vmatprep.subr.bf16.mxu0 %v481_v1  ;;  %354 = vmatprep.mubr.msk.f32.mxu0 %vm482_vm0, %v483_v2  ;;  %v54_v4 = vld [vmem:[%s617_s1 + $0x8] sm:$0xff]  ;;  %v137_v6 = vld [vmem:[%s619_s3] sm:$0xff]  ;;  %vm62_vm1 = vcmask 130048   ;;  %v139_v10 = vld [vmem:[%s619_s3 + $0x10] sm:$0xff]  ;;  %vm152_vm2 = vcmask 523264   ;;  %vm315_vm3 = vcmask 7168  }
  0x2a   :  { %398 = vmatprep.subr.bf16.mxu1 %v481_v1  ;;  %373 = vmatprep.mubr.msk.f32.mxu1 %vm482_vm0, %v483_v2  ;;  %v396_v5 = vpack.c.bf16 %v54_v4, %v53_v3  ;;  %v138_v7 = vld [vmem:[%s619_s3 + $0x8] sm:$0xff]  ;;  %v140_v11 = vld [vmem:[%s619_s3 + $0x18] sm:$0xff]  ;;  %v141_v13 = vld [vmem:[%s619_s3 + $0x20] sm:$0xff] }
  0x2b   :  { %v399_v8 = vpack.c.bf16 %v138_v7, %v137_v6  ;;  %v52_v9 = vld [vmem:[#allocation3] sm:$0xff]  ;;  %v402_v12 = vpack.c.bf16 %v140_v11, %v139_v10  ;;  %v143_v16 = vld [vmem:[%s619_s3 + $0x30] sm:$0xff]  ;;  %v144_v17 = vld [vmem:[%s619_s3 + $0x38] sm:$0xff] }
  0x2c   :  { %397 = vmatpush3.bf16.msra.mxu0 %v396_v5  ;;  %v142_v14 = vld [vmem:[%s619_s3 + $0x28] sm:$0xff]  ;;  %v408_v18 = vpack.c.bf16 %v144_v17, %v143_v16  ;;  %v227_v19 = vld [vmem:[%s621_s5] sm:$0xff]  ;;  %v229_v27 = vld [vmem:[%s621_s5 + $0x10] sm:$0xff] }
  0x2d   :  { %400 = vmatpush3.bf16.msra.mxu1 %v399_v8  ;;  %410 = vmatprep.subr.bf16.mxu0 %v481_v1  ;;  %v405_v15 = vpack.c.bf16 %v142_v14, %v141_v13  ;;  %v228_v20 = vld [vmem:[%s621_s5 + $0x8] sm:$0xff]  ;;  %v230_v28 = vld [vmem:[%s621_s5 + $0x18] sm:$0xff]  ;;  %v231_v30 = vld [vmem:[%s621_s5 + $0x20] sm:$0xff] }
  0x2e   :  { %401 = vmatprep.subr.bf16.mxu1 %v481_v1  ;;  %v411_v21 = vpack.c.bf16 %v228_v20, %v227_v19  ;;  %v323_v22 = vld [vmem:[#allocation5] ss:$0 sm:$0xff]  ;;  %v414_v29 = vpack.c.bf16 %v230_v28, %v229_v27  ;;  %v233_v33 = vld [vmem:[%s621_s5 + $0x30] sm:$0xff]  ;;  %v234_v34 = vld [vmem:[%s621_s5 + $0x38] sm:$0xff] }
  0x2f   :  { %355 = vmatmul.mubr.msk.f32.vlgmr.msra.gmra.mrb[0].mxu0 %vm62_vm1, %v52_v9  ;;  %v232_v31 = vld [vmem:[%s621_s5 + $0x28] sm:$0xff]  ;;  %v420_v35 = vpack.c.bf16 %v234_v34, %v233_v33  ;;  %v325_v36 = vld [vmem:[%s620_s4] ss:$0 sm:$0xff] }
  0x30   :  { %392 = vmatprep.mubr.msk.f32.mxu0 %vm482_vm0, %v483_v2  ;;  %412 = vmatpush3.bf16.msra.mxu0 %v411_v21  ;;  %v417_v32 = vpack.c.bf16 %v232_v31, %v231_v30  ;;  %v327_v41 = vld [vmem:[#allocation2] ss:$0 sm:$0xff] }
  0x31   :  { %403 = vmatpush3.bf16.msra.mxu1 %v402_v12  ;;  %413 = vmatprep.subr.bf16.mxu0 %v481_v1 }
  0x32   :  { %404 = vmatprep.subr.bf16.mxu1 %v481_v1 }
  0x34   :  { %415 = vmatpush3.bf16.msra.mxu0 %v414_v29 }
  0x35   :  { %406 = vmatpush3.bf16.msra.mxu1 %v405_v15  ;;  %416 = vmatprep.subr.bf16.mxu0 %v481_v1 }
  0x36   :  { %407 = vmatprep.subr.bf16.mxu1 %v481_v1 }
  0x38   :  { %418 = vmatpush3.bf16.msra.mxu0 %v417_v32 }
  0x39   :  { %409 = vmatpush3.bf16.msra.mxu1 %v408_v18  ;;  %419 = vmatprep.subr.bf16.mxu0 %v481_v1 }
  0x3c   :  { %421 = vmatpush3.bf16.msra.mxu0 %v420_v35 }
 0x102   :  { %v132_v23 = vpop.f32.mrb[0].mxu0 }
 0x103   :  { %v133_v24 = vadd.f32 %v323_v22, %v132_v23  ;;  %v356_v25 = vpop.f32.mrb[1].mxu0 }
 0x105   :  { %427 = vtanh.f32 %v133_v24 }
 0x10f   :  { %v428_v26 = vpop.eup %427 }
 0x110   :  { %374 = vmatmul.mubr.msk.f32.vlgmr.msra.gmra.mrb[0].mxu1 %vm152_vm2, %v428_v26 }
 0x1e3   :  { %v222_v37 = vpop.f32.mrb[0].mxu1 }
 0x1e4   :  { %v223_v38 = vadd.f32 %v325_v36, %v222_v37  ;;  %v375_v39 = vpop.f32.mrb[1].mxu1 }
 0x1e6   :  { %429 = vtanh.f32 %v223_v38 }
 0x1f0   :  { %v430_v40 = vpop.eup %429 }
 0x1f1   :  { %393 = vmatmul.mubr.msk.f32.vlgmr.msra.gmra.mrb[2].mxu0 %vm152_vm2, %v430_v40 }
 0x2c4   :  { %v311_v42 = vpop.f32.mrb[2].mxu0 }
 0x2c5   :  { %v312_v43 = vadd.f32 %v327_v41, %v311_v42  ;;  %v394_v44 = vpop.f32.mrb[3].mxu0 }
 0x2c7   :  { %316 = vst.msk [vmem:[%s623_s7] sm:$0xff] %vm315_vm3, %v312_v43 }
 0x2c8   :  { %321 = vsyncpa [#allocation4], 1 }
 0x2c9   :  { %322 = vsyncpa [#allocation6], 1 }

</bundles_post_ra>
